<compile_context>
chip_gen: v7x
topology: tpu7x:2x2x1
jax: 0.10.0
libtpu: 0.0.40
codegen_flags: <defaults>
</compile_context>

<pallas_src>
import jax
import jax.numpy as jnp
from jax.experimental import pallas as pl
from jax.experimental.pallas import tpu as pltpu

LANE = 128
ROW_ALIGN = 16          # sublane multiple valid for f32 (8) and bf16 (16) blocks
MAX_BLOCK_ROWS = 8192   # (8192, 128) f32 = 4 MiB per input block
ACC_ROWS = 128          # in-kernel chunk rows / fixed accumulator rows (64 KiB)


def _round_up(a: int, b: int) -> int:
    return -(-a // b) * b


def _cdiv(a: int, b: int) -> int:
    return -(-a // b)


def _int_pow(v, gamma):
    """ (v ** gamma) with repeated multiplies for small integer gamma. """
    g = float(gamma)
    if g == int(g) and 0 <= int(g) <= 8:
        gi = int(g)
        if gi == 0:
            return jnp.ones_like(v)
        out = v
        for _ in range(gi - 1):
            out = out * v
        return out
    # Generic path: lowers to exp(gamma*log(v)) -> 2 extra EUP ops / element.
    return v ** jnp.float32(g)


def _make_kernel(*, alpha, gamma, total, block_rows, acc_rows,
                 binary_targets, needs_mask):
    alpha = float(alpha)
    inv_n = 1.0 / float(total)
    full_rows = total // LANE          # number of fully-valid rows
    rem = total % LANE                 # valid lanes in row `full_rows`
    n_chunks = block_rows // acc_rows

    def kernel(x_ref, t_ref, out_ref, acc_ref):
        # NOTE: axis 1 MUST stay the innermost (sequential, "arbitrary") grid
        # axis: the accumulator reset / finalize below relies on it.
        j = pl.program_id(0)           # outer ("parallel") axis
        i = pl.program_id(1)           # inner reduction axis

        @pl.when(i == 0)
        def _():
            acc_ref[...] = jnp.zeros_like(acc_ref)

        block_row0 = (j * pl.num_programs(1) + i) * block_rows

        def process_chunk(r0):
            x = x_ref[pl.ds(r0, acc_rows), :].astype(jnp.float32)
            t = t_ref[pl.ds(r0, acc_rows), :].astype(jnp.float32)

            # BCE with logits: max(x,0) - x*t + log1p(exp(-|x|))
            # == -(t*log(sigmoid(x)) + (1-t)*log(1-sigmoid(x)))
            # (matches torch's clamped path except for |x| > ~100)
            e = jnp.exp(-jnp.abs(x))                           # EUP #1
            bce = jnp.maximum(x, 0.0) - x * t + jnp.log1p(e)   # EUP #2

            if binary_targets:
                # pt = p^t (1-p)^(1-t) collapses to a select for t in {0,1};
                # reuse e so no extra transcendental is needed.
                p = jnp.where(x >= 0.0, 1.0, e) / (1.0 + e)    # sigmoid(x)
                one_minus_pt = jnp.where(t >= 0.5, 1.0 - p, p)
            else:
                one_minus_pt = -jnp.expm1(-bce)                # EUP #3 (soft t)

            alpha_w = alpha * t + (1.0 - alpha) * (1.0 - t)
            contrib = _int_pow(one_minus_pt, gamma) * alpha_w * bce

            if needs_mask:
                rows = (block_row0 + r0
                        + jax.lax.broadcasted_iota(jnp.int32, (acc_rows, LANE), 0))
                if rem == 0:
                    m = rows < full_rows
                else:
                    lanes = jax.lax.broadcasted_iota(jnp.int32, (acc_rows, LANE), 1)
                    m = (rows < full_rows) | ((rows == full_rows) & (lanes < rem))
                contrib = jnp.where(m, contrib, 0.0)

            acc_ref[...] += contrib

        if n_chunks == 1:
            process_chunk(0)
        else:
            @pl.loop(0, n_chunks)
            def _(c):
                process_chunk(pl.multiple_of(c * acc_rows, acc_rows))

        @pl.when(i == pl.num_programs(1) - 1)
        def _():
            # Reduce the accumulator to one lane-dense (8, 128) slab per split;
            # the final cross-lane reduce happens in the (tiny) wrapper sum.
            partial = acc_ref[...].reshape(acc_rows // 8, 8, LANE).sum(axis=0)
            out_ref[0] = partial * jnp.float32(inv_n)

    return kernel


def _num_tensorcore_splits() -> int:
    # 2 TensorCores per chip on v7x; 1 on v5e / v6e.
    try:
        kind = jax.devices()[0].device_kind.lower()
    except Exception:
        return 1
    return 2 if "v7" in kind else 1


def focal_loss_bce(inputs, targets, alpha=0.25, gamma=2.0,
                   binary_targets=None, num_splits=None):
    """Pallas implementation of FocalLossBCE.forward. Returns a scalar f32.

    binary_targets: True -> targets are exactly 0/1 (fast path, 2 EUP/elem);
                    False -> general soft targets in [0, 1];
                    None  -> auto (True iff targets dtype is bool/integer).
    """
    assert inputs.shape == targets.shape
    total = int(inputs.size)

    # Normalize target dtype: bool/int targets are exactly representable in
    # bf16 (half the HBM bytes of f32); float targets pass through unchanged.
    if targets.dtype == jnp.bool_ or jnp.issubdtype(targets.dtype, jnp.integer):
        targets = targets.astype(jnp.bfloat16)
        if binary_targets is None:
            binary_targets = True
    if binary_targets is None:
        binary_targets = False

    x_flat = inputs.reshape(-1)
    t_flat = targets.reshape(-1)

    # Only pad when the element count is not a multiple of the lane width;
    # all block-granularity raggedness is handled by the in-kernel mask
    # (no HBM rewrite of the inputs).
    padded = _round_up(total, LANE)
    if padded != total:
        # TODO(synk): handle the <128-element tail without this (small) jnp.pad.
        x_flat = jnp.pad(x_flat, (0, padded - total))
        t_flat = jnp.pad(t_flat, (0, padded - total))

    rows2d = padded // LANE
    x2d = x_flat.reshape(rows2d, LANE)
    t2d = t_flat.reshape(rows2d, LANE)

    if num_splits is None:
        num_splits = _num_tensorcore_splits()
    rows_per_split = _cdiv(rows2d, num_splits)
    block_rows = min(MAX_BLOCK_ROWS, _round_up(rows_per_split, ROW_ALIGN))
    if block_rows >= ACC_ROWS:
        block_rows = min(MAX_BLOCK_ROWS, _round_up(block_rows, ACC_ROWS))
        acc_rows = ACC_ROWS
    else:
        acc_rows = block_rows

    n_row_blocks = _cdiv(rows2d, block_rows)
    num_splits = min(num_splits, n_row_blocks)
    steps_per_split = _cdiv(n_row_blocks, num_splits)
    covered_rows = num_splits * steps_per_split * block_rows
    needs_mask = (covered_rows * LANE) != total

    def block_map(j, i):
        b = j * steps_per_split + i
        # Clamp so padded grid steps never issue an out-of-bounds DMA;
        # their contribution is zeroed by the in-kernel mask.
        return (jnp.minimum(b, n_row_blocks - 1), 0)

    kernel = _make_kernel(alpha=alpha, gamma=gamma, total=total,
                          block_rows=block_rows, acc_rows=acc_rows,
                          binary_targets=binary_targets, needs_mask=needs_mask)

    cost = pl.CostEstimate(
        flops=15 * total,
        transcendentals=(2 if binary_targets else 3) * total,
        bytes_accessed=int(x2d.size * x2d.dtype.itemsize
                           + t2d.size * t2d.dtype.itemsize
                           + num_splits * 8 * LANE * 4))

    partials = pl.pallas_call(
        kernel,
        out_shape=jax.ShapeDtypeStruct((num_splits, 8, LANE), jnp.float32),
        grid_spec=pltpu.PrefetchScalarGridSpec(
            num_scalar_prefetch=0,
            grid=(num_splits, steps_per_split),
            in_specs=[
                pl.BlockSpec((block_rows, LANE), block_map),
                pl.BlockSpec((block_rows, LANE), block_map),
            ],
            out_specs=pl.BlockSpec((1, 8, LANE), lambda j, i: (j, 0, 0)),
            scratch_shapes=[pltpu.VMEM((acc_rows, LANE), jnp.float32)],
        ),
        compiler_params=pltpu.CompilerParams(
            dimension_semantics=("parallel", "arbitrary"),
        ),
        cost_estimate=cost,
    )(x2d, t2d)

    return jnp.sum(partials)


def focal_loss_bce_ref(inputs, targets, alpha=0.25, gamma=2.0):
    """Pure-JAX reference mirroring the PyTorch module (torch's -100 log clamp)."""
    p = jax.nn.sigmoid(inputs.astype(jnp.float32))
    t = targets.astype(jnp.float32)
    log_p = jnp.maximum(jnp.log(p), -100.0)
    log_1mp = jnp.maximum(jnp.log(1.0 - p), -100.0)
    bce = -(t * log_p + (1.0 - t) * log_1mp)
    pt = jnp.exp(-bce)
    fw = (1.0 - pt) ** gamma * (alpha * t + (1.0 - alpha) * (1.0 - t))
    return jnp.mean(fw * bce)


if __name__ == "__main__":
    key = jax.random.PRNGKey(0)
    k1, k2, k3, k4 = jax.random.split(key, 4)

    alpha, gamma = 0.25, 2.0  # module parameters

    # Case 1: NCHW logits, binary (bool) targets -> binary fast path.
    B, C, H, W = 2, 4, 16, 16
    logits = jax.random.normal(k1, (B, C, H, W), dtype=jnp.float32)
    targets = jax.random.bernoulli(k2, p=0.3, shape=(B, C, H, W))  # bool 0/1

    loss = focal_loss_bce(logits, targets, alpha=alpha, gamma=gamma)
    jax.block_until_ready(loss)
    ref = focal_loss_bce_ref(logits, targets.astype(jnp.float32), alpha, gamma)
    assert jnp.allclose(loss, ref, rtol=1e-4, atol=1e-6), (loss, ref)

    # Case 2: soft targets in [0,1], ragged element count (not a multiple of
    # 128) -> general path + in-kernel tail masking.
    shape2 = (3, 5, 37, 29)  # 16095 elements
    logits2 = jax.random.normal(k3, shape2, dtype=jnp.float32)
    targets2 = jax.random.uniform(k4, shape2, dtype=jnp.float32)

    loss2 = focal_loss_bce(logits2, targets2, alpha=alpha, gamma=gamma)
    jax.block_until_ready(loss2)
    ref2 = focal_loss_bce_ref(logits2, targets2, alpha, gamma)
    assert jnp.allclose(loss2, ref2, rtol=1e-4, atol=1e-6), (loss2, ref2)

    print("KERNEL_OK")
</pallas_src>

<mosaic_0001>
module attributes {stable_mosaic.version = 11 : i64} {
  func.func @kernel(%arg0: i32, %arg1: i32, %arg2: memref<16x128xf32, #tpu.memory_space<vmem>>, %arg3: memref<16x128xbf16, #tpu.memory_space<vmem>>, %arg4: memref<1x8x128xf32, #tpu.memory_space<vmem>>, %arg5: memref<16x128xf32, #tpu.memory_space<vmem>>) attributes {dimension_semantics = [#tpu.dimension_semantics<parallel>, #tpu.dimension_semantics<arbitrary>], iteration_bounds = array<i64: 1, 1>, scalar_prefetch = 0 : i64, scratch_operands = 1 : i64, tpu.core_type = #tpu.core_type<tc>, window_params = [{transform_indices = @transform_0, window_bounds = array<i64: 16, 128>}, {transform_indices = @transform_1, window_bounds = array<i64: 16, 128>}, {transform_indices = @transform_2, window_bounds = array<i64: 1, 8, 128>}]} {
    %c0_i32 = arith.constant 0 : i32
    %0 = arith.cmpi eq, %arg1, %c0_i32 : i32
    %1 = arith.extui %0 : i1 to i32
    %c0_i32_0 = arith.constant 0 : i32
    %2 = arith.cmpi ne, %1, %c0_i32_0 : i32
    scf.if %2 {
      %cst_19 = arith.constant 0.000000e+00 : f32
      %44 = vector.broadcast %cst_19 : f32 to vector<16x128xf32>
      %c0_20 = arith.constant 0 : index
      %c0_21 = arith.constant 0 : index
      %45 = vector.load %arg5[%c0_20, %c0_21] : memref<16x128xf32, #tpu.memory_space<vmem>>, vector<16x128xf32>
      tpu.vector_store %arg5[%c0_20, %c0_21], %44 {strides = array<i32>} : memref<16x128xf32, #tpu.memory_space<vmem>>, vector<16x128xf32>,
    } else {
    }
    %c0 = arith.constant 0 : index
    %c0_1 = arith.constant 0 : index
    %3 = vector.load %arg2[%c0, %c0_1] : memref<16x128xf32, #tpu.memory_space<vmem>>, vector<16x128xf32>
    %c0_2 = arith.constant 0 : index
    %c0_3 = arith.constant 0 : index
    %4 = vector.load %arg3[%c0_2, %c0_3] : memref<16x128xbf16, #tpu.memory_space<vmem>>, vector<16x128xbf16>
    %5 = arith.extf %4 : vector<16x128xbf16> to vector<16x128xf32>
    %6 = math.absf %3 : vector<16x128xf32>
    %cst = arith.constant 0.000000e+00 : f32
    %7 = vector.broadcast %cst : f32 to vector<16x128xf32>
    %8 = arith.subf %7, %6 : vector<16x128xf32>
    %9 = math.exp %8 : vector<16x128xf32>
    %cst_4 = arith.constant 0.000000e+00 : f32
    %10 = vector.broadcast %cst_4 : f32 to vector<16x128xf32>
    %11 = arith.maximumf %3, %10 : vector<16x128xf32>
    %12 = arith.mulf %3, %5 : vector<16x128xf32>
    %13 = arith.subf %11, %12 : vector<16x128xf32>
    %14 = math.log1p %9 : vector<16x128xf32>
    %15 = arith.addf %13, %14 : vector<16x128xf32>
    %cst_5 = arith.constant 0.000000e+00 : f32
    %16 = vector.broadcast %cst_5 : f32 to vector<16x128xf32>
    %17 = arith.cmpf oge, %3, %16 : vector<16x128xf32>
    %cst_6 = arith.constant 1.000000e+00 : f32
    %18 = vector.broadcast %cst_6 : f32 to vector<16x128xf32>
    %19 = arith.select %17, %18, %9 : vector<16x128xi1>, vector<16x128xf32>
    %cst_7 = arith.constant 1.000000e+00 : f32
    %20 = vector.broadcast %cst_7 : f32 to vector<16x128xf32>
    %21 = arith.addf %20, %9 : vector<16x128xf32>
    %22 = arith.divf %19, %21 : vector<16x128xf32>
    %cst_8 = arith.constant 5.000000e-01 : f32
    %23 = vector.broadcast %cst_8 : f32 to vector<16x128xf32>
    %24 = arith.cmpf oge, %5, %23 : vector<16x128xf32>
    %cst_9 = arith.constant 1.000000e+00 : f32
    %25 = vector.broadcast %cst_9 : f32 to vector<16x128xf32>
    %26 = arith.subf %25, %22 : vector<16x128xf32>
    %27 = arith.select %24, %26, %22 : vector<16x128xi1>, vector<16x128xf32>
    %cst_10 = arith.constant 2.500000e-01 : f32
    %28 = vector.broadcast %cst_10 : f32 to vector<16x128xf32>
    %29 = arith.mulf %28, %5 : vector<16x128xf32>
    %cst_11 = arith.constant 1.000000e+00 : f32
    %30 = vector.broadcast %cst_11 : f32 to vector<16x128xf32>
    %31 = arith.subf %30, %5 : vector<16x128xf32>
    %cst_12 = arith.constant 7.500000e-01 : f32
    %32 = vector.broadcast %cst_12 : f32 to vector<16x128xf32>
    %33 = arith.mulf %32, %31 : vector<16x128xf32>
    %34 = arith.addf %29, %33 : vector<16x128xf32>
    %35 = arith.mulf %27, %27 : vector<16x128xf32>
    %36 = arith.mulf %35, %34 : vector<16x128xf32>
    %37 = arith.mulf %36, %15 : vector<16x128xf32>
    %c0_13 = arith.constant 0 : index
    %c0_14 = arith.constant 0 : index
    %38 = vector.load %arg5[%c0_13, %c0_14] : memref<16x128xf32, #tpu.memory_space<vmem>>, vector<16x128xf32>
    %39 = arith.addf %38, %37 : vector<16x128xf32>
    %c0_15 = arith.constant 0 : index
    %c0_16 = arith.constant 0 : index
    %40 = vector.load %arg5[%c0_15, %c0_16] : memref<16x128xf32, #tpu.memory_space<vmem>>, vector<16x128xf32>
    tpu.vector_store %arg5[%c0_15, %c0_16], %39 {strides = array<i32>} : memref<16x128xf32, #tpu.memory_space<vmem>>, vector<16x128xf32>,
    %c0_i32_17 = arith.constant 0 : i32
    %41 = arith.cmpi eq, %arg1, %c0_i32_17 : i32
    %42 = arith.extui %41 : i1 to i32
    %c0_i32_18 = arith.constant 0 : i32
    %43 = arith.cmpi ne, %42, %c0_i32_18 : i32
    scf.if %43 {
      %c0_19 = arith.constant 0 : index
      %c0_20 = arith.constant 0 : index
      %44 = vector.load %arg5[%c0_19, %c0_20] : memref<16x128xf32, #tpu.memory_space<vmem>>, vector<16x128xf32>
      %45 = vector.shape_cast %44 : vector<16x128xf32> to vector<2x8x128xf32>
      %cst_21 = arith.constant dense<0.000000e+00> : vector<8x128xf32>
      %46 = vector.multi_reduction <add>, %45, %cst_21 [0] : vector<2x8x128xf32> to vector<8x128xf32>
      %cst_22 = arith.constant 4.8828125E-4 : f32
      %47 = vector.broadcast %cst_22 : f32 to vector<8x128xf32>
      %48 = arith.mulf %46, %47 : vector<8x128xf32>
      %c0_23 = arith.constant 0 : index
      %c0_24 = arith.constant 0 : index
      %c0_25 = arith.constant 0 : index
      %49 = vector.load %arg4[%c0_23, %c0_24, %c0_25] : memref<1x8x128xf32, #tpu.memory_space<vmem>>, vector<1x8x128xf32>
      %50 = vector.shape_cast %49 : vector<1x8x128xf32> to vector<8x128xf32>
      %51 = vector.shape_cast %48 : vector<8x128xf32> to vector<1x8x128xf32>
      tpu.vector_store %arg4[%c0_23, %c0_24, %c0_25], %51 {strides = array<i32>} : memref<1x8x128xf32, #tpu.memory_space<vmem>>, vector<1x8x128xf32>,
    } else {
    }
    return
  }
  func.func @transform_0(%arg0: i32, %arg1: i32) -> (i32, i32) {
    %c1_i32 = arith.constant 1 : i32
    %0 = arith.muli %arg0, %c1_i32 : i32
    %1 = arith.addi %0, %arg1 : i32
    %c0_i32 = arith.constant 0 : i32
    %2 = arith.minsi %1, %c0_i32 : i32
    %c0_i32_0 = arith.constant 0 : i32
    %c0_i32_1 = arith.constant 0 : i32
    return %2, %c0_i32_0 : i32, i32
  }
  func.func @transform_1(%arg0: i32, %arg1: i32) -> (i32, i32) {
    %c1_i32 = arith.constant 1 : i32
    %0 = arith.muli %arg0, %c1_i32 : i32
    %1 = arith.addi %0, %arg1 : i32
    %c0_i32 = arith.constant 0 : i32
    %2 = arith.minsi %1, %c0_i32 : i32
    %c0_i32_0 = arith.constant 0 : i32
    %c0_i32_1 = arith.constant 0 : i32
    return %2, %c0_i32_0 : i32, i32
  }
  func.func @transform_2(%arg0: i32, %arg1: i32) -> (i32, i32, i32) {
    %c0_i32 = arith.constant 0 : i32
    %c0_i32_0 = arith.constant 0 : i32
    %c0_i32_1 = arith.constant 0 : i32
    return %arg0, %c0_i32, %c0_i32_0 : i32, i32, i32
  }
}

</mosaic_0001>

<bundles_post_ra>
// kernel: tpu_custom_call.1
= control target key start
LH: loop header
LB: loop body
LE: loop exit
PB: predicated region body
PF: predicated region fallthrough
CT: control target
= control target key end

     0   :  { %7 = vsyncpa [#allocation4], 0  ;;  %s335_s0 = inlined_call_operand.hbm [shape: f32[16,128], index: 0, kind: input, shape index: {}]   ;;  %s336_s1 = inlined_call_operand.hbm [shape: bf16[16,128], index: 1, kind: input, shape index: {}]   ;;  %s337_s2 = inlined_call_operand.hbm [shape: f32[1,8,128], index: 2, kind: output, shape index: {}]  }
   0x1   :  { %8 = vsyncpa [#allocation7], 0 }
   0x2   :  { %9 = vsyncpa [#allocation5], 0  ;;  %s265_s9 = smov [#allocation3]   ;;  %s193_s13 = scalar_lea.hbm %s335_s0, 256 }
   0x3   :  { %s21_s10 = sshll.u32 %s265_s9, 4  ;;  %p194_p0 = scmp.ne.s32.totalorder %s335_s0, %s193_s13  ;;  %s22_s10 = int_to_ptr.vmem [resolvable:$true] %s21_s10 }
   0x4   :  { %p197_p1 = scmp.lt.u32.totalorder %s193_s13, %s335_s0 }
   0x6   :  { %p199_p2 = pnand %p197_p1, %p194_p0 }
   0x8   :  { %202 = shalt.err (!%p199_p2)
}
   0x9   :  { %s203_s18 = scalar_lea.vmem %s22_s10, 256  ;;  %p208_p4 = scmp.lt.s32.totalorder %s22_s10, %s22_s10 }
   0xa   :  { %p204_p3 = scmp.ne.s32.totalorder %s22_s10, %s203_s18  ;;  %p209_p5 = scmp.lt.s32.totalorder %s203_s18, %s203_s18 }
   0xc   :  { %p210_p6 = por %p209_p5, %p208_p4 }
   0xe   :  { %p211_p7 = pnand %p210_p6, %p204_p3 }
  0x10   :  { %214 = shalt.err (!%p211_p7)
}
  0x11   :  { %s266_s19 = smov 128   ;;  %s267_s20 = smov 8  }
  0x12   :  { %27 = dma.hbm_to_vmem [thread:$0]  %s335_s0, 256, %s22_s10, [#allocation4], %s266_s19, %s266_s19, %s267_s20  }
  0x13   :  { %s268_s23 = smov [#allocation6]   ;;  %s215_s27 = scalar_lea.hbm %s336_s1, 128 }
  0x14   :  { %s39_s24 = sshll.u32 %s268_s23, 4  ;;  %p216_p8 = scmp.ne.s32.totalorder %s336_s1, %s215_s27  ;;  %s40_s24 = int_to_ptr.vmem [resolvable:$true] %s39_s24 }
  0x15   :  { %p219_p9 = scmp.lt.u32.totalorder %s215_s27, %s336_s1 }
  0x17   :  { %p221_p10 = pnand %p219_p9, %p216_p8 }
  0x19   :  { %224 = shalt.err (!%p221_p10)
}
  0x1a   :  { %s225_s4 = scalar_lea.vmem %s40_s24, 128  ;;  %p230_p12 = scmp.lt.s32.totalorder %s40_s24, %s40_s24 }
  0x1b   :  { %p226_p11 = scmp.ne.s32.totalorder %s40_s24, %s225_s4  ;;  %p231_p13 = scmp.lt.s32.totalorder %s225_s4, %s225_s4 }
  0x1d   :  { %p232_p0 = por %p231_p13, %p230_p12 }
  0x1f   :  { %p233_p1 = pnand %p232_p0, %p226_p11 }
  0x21   :  { %236 = shalt.err (!%p233_p1)
}
  0x22   :  { %s269_s0 = smov 64   ;;  %s270_s5 = smov 4  }
  0x23   :  { %45 = dma.hbm_to_vmem [thread:$0]  %s336_s1, 128, %s40_s24, [#allocation7], %s269_s0, %s269_s0, %s270_s5  }
  0x24   :  { %259 = dma.done.wait [#allocation4], 256  }
  0x25   :  { %260 = vsyncadd [#allocation4], 4294967040 }
  0x26   :  { %261 = dma.done.wait [#allocation7], 128  }
  0x27   :  { %262 = vsyncadd [#allocation7], 4294967168  ;;  %v66_v0 = vld [vmem:[#allocation3] sm:$0xff]  ;;  %v67_v1 = vld [vmem:[#allocation3 + $0x8] sm:$0xff]  ;;  %s271_s1 = smov [#allocation8]  }
  0x28   :  { %v72_v2 = vand.u32 2147483647, %v66_v0  ;;  %v73_v3 = vand.u32 2147483647, %v67_v1  ;;  %v171_v12 = vld [vmem:[#allocation6] sm:$0xff]   ;;  %vm106_vm0 = vcmp.ge.f32.partialorder %v66_v0, 0.0 }
  0x29   :  { %v172_v14 = vunpack.c.l.bf16 %v171_v12  ;;  %v173_v16 = vunpack.c.h.bf16 %v171_v12  ;;  %vm107_vm1 = vcmp.ge.f32.partialorder %v67_v1, 0.0  ;;  %v80_v21 = vmax.f32 %v66_v0, 0.0  ;;  %s156_s8 = sshll.u32 %s271_s1, 4  ;;  %s157_s8 = int_to_ptr.vmem [resolvable:$true] %s156_s8 }
  0x2a   :  { %v74_v4 = vsub.f32 0.0, %v72_v2  ;;  %v75_v5 = vsub.f32 0.0, %v73_v3  ;;  %v81_v25 = vmax.f32 %v67_v1, 0.0  ;;  %s237_s9 = scalar_lea.vmem %s157_s8, 128  ;;  %p242_p3 = scmp.lt.s32.totalorder %s157_s8, %s157_s8 }
  0x2b   :  { %v124_v20 = vsub.f32 1.0, %v172_v14  ;;  %v125_v23 = vsub.f32 1.0, %v173_v16  ;;  %v82_v26 = vmul.f32 %v172_v14, %v66_v0  ;;  %v83_v27 = vmul.f32 %v173_v16, %v67_v1  ;;  %p238_p2 = scmp.ne.s32.totalorder %s157_s8, %s237_s9  ;;  %p243_p4 = scmp.lt.s32.totalorder %s237_s9, %s237_s9 }
  0x2c   :  { %v76_v6 = vmul.f32 1.442695, %v74_v4  ;;  %v78_v7 = vmul.f32 1.442695, %v75_v5  ;;  %v122_v33 = vmul.f32 0.25, %v172_v14  ;;  %v123_v42 = vmul.f32 0.25, %v173_v16 }
  0x2d   :  { %v126_v38 = vmul.f32 0.75, %v124_v20  ;;  %v127_v43 = vmul.f32 0.75, %v125_v23  ;;  %v84_v44 = vsub.f32 %v80_v21, %v82_v26  ;;  %vm116_vm4 = vcmp.ge.f32.partialorder %v172_v14, 0.5  ;;  %p244_p5 = por %p243_p4, %p242_p3 }
  0x2e   :  { %181 = vpow2.f32 %v76_v6  ;;  %v85_v46 = vsub.f32 %v81_v25, %v83_v27  ;;  %vm117_vm5 = vcmp.ge.f32.partialorder %v173_v16, 0.5 }
  0x2f   :  { %183 = vpow2.f32 %v78_v7  ;;  %v128_v51 = vadd.f32 %v126_v38, %v122_v33  ;;  %v129_v53 = vadd.f32 %v127_v43, %v123_v42  ;;  %p245_p6 = pnand %p244_p5, %p238_p2 }
  0x38   :  { %v182_v8 = vpop.eup %181 }
  0x39   :  { %v184_v9 = vpop.eup %183  ;;  %v86_v10 = vadd.f32 1.0, %v182_v8  ;;  %v89_v13 = vmul.f32 -0.5, %v182_v8  ;;  %v92_v18 = vand.u32 2147483647, %v182_v8  ;;  %v108_v28 = vsel %vm106_vm0, 1.0, %v182_v8 }
  0x3a   :  { %v95_v11 = vadd.f32 1.0, %v184_v9  ;;  %v98_v15 = vmul.f32 -0.5, %v184_v9  ;;  %v101_v22 = vand.u32 2147483647, %v184_v9  ;;  %v109_v32 = vsel %vm107_vm1, 1.0, %v184_v9 }
  0x3b   :  { %185 = vlog2.f32 %v86_v10  ;;  %v90_v17 = vadd.f32 1.0, %v89_v13  ;;  %vm311_vm2 = vcmp.lt.f32.partialorder %v92_v18, 0.0004427343 }
  0x3c   :  { %187 = vlog2.f32 %v95_v11  ;;  %v99_v19 = vadd.f32 1.0, %v98_v15  ;;  %vm315_vm3 = vcmp.lt.f32.partialorder %v101_v22, 0.0004427343 }
  0x3d   :  { %189 = vrcp.f32 %v86_v10  ;;  %v91_v31 = vmul.f32 %v182_v8, %v90_v17 }
  0x3e   :  { %191 = vrcp.f32 %v95_v11  ;;  %v100_v37 = vmul.f32 %v184_v9, %v99_v19 }
  0x45   :  { %v186_v24 = vpop.eup %185 }
  0x46   :  { %v188_v29 = vpop.eup %187  ;;  %v88_v30 = vmul.f32 0.6931472, %v186_v24 }
  0x47   :  { %v190_v34 = vpop.eup %189  ;;  %v97_v36 = vmul.f32 0.6931472, %v188_v29 }
  0x48   :  { %v192_v39 = vpop.eup %191  ;;  %v113_v41 = vmul.f32 %v190_v34, %v108_v28  ;;  %v94_v47 = vsel %vm311_vm2, %v91_v31, %v88_v30 }
  0x49   :  { %v115_v45 = vmul.f32 %v192_v39, %v109_v32  ;;  %v103_v49 = vsel %vm315_vm3, %v100_v37, %v97_v36  ;;  %v104_v54 = vadd.f32 %v94_v47, %v84_v44 }
  0x4a   :  { %v118_v48 = vsub.f32 1.0, %v113_v41  ;;  %v105_v57 = vadd.f32 %v103_v49, %v85_v46 }
  0x4b   :  { %v119_v50 = vsub.f32 1.0, %v115_v45 }
  0x4c   :  { %v120_v52 = vsel %vm116_vm4, %v118_v48, %v113_v41 }
  0x4d   :  { %v121_v55 = vsel %vm117_vm5, %v119_v50, %v115_v45  ;;  %v130_v56 = vmul.f32 %v120_v52, %v120_v52 }
  0x4e   :  { %v131_v58 = vmul.f32 %v121_v55, %v121_v55 }
  0x4f   :  { %v132_v59 = vmul.f32 %v130_v56, %v128_v51 }
  0x50   :  { %v133_v60 = vmul.f32 %v131_v58, %v129_v53 }
  0x51   :  { %v134_v61 = vmul.f32 %v132_v59, %v104_v54 }
  0x52   :  { %v135_v62 = vmul.f32 %v133_v60, %v105_v57 }
  0x54   :  { %v147_v63 = vadd.f32 %v135_v62, %v134_v61 }
  0x56   :  { %v148_v0 = vmul.f32 0.00048828125, %v147_v63 }
  0x58   :  { %149 = vst [vmem:[#allocation8] sm:$0xff] %v148_v0 }
  0x59   :  { %248 = shalt.err (!%p245_p6)
}
  0x5a   :  { %s249_s12 = scalar_lea.hbm %s337_s2, 128 }
  0x5b   :  { %p250_p7 = scmp.ne.s32.totalorder %s337_s2, %s249_s12  ;;  %p253_p8 = scmp.lt.u32.totalorder %s249_s12, %s337_s2 }
  0x5d   :  { %p255_p9 = pnand %p253_p8, %p250_p7 }
  0x5f   :  { %258 = shalt.err (!%p255_p9)
}
  0x60   :  { %159 = dma.vmem_to_hbm [thread:$0]  %s157_s8, 128, %s337_s2, [#allocation5]  }
  0x61   :  { %263 = dma.done.wait [#allocation5], 128  }
  0x62   :  { %264 = vsyncadd [#allocation5], 4294967168 }
  0x63   :  { %163 = vsyncpa [#allocation4], 1 }
  0x64   :  { %164 = vsyncpa [#allocation7], 1 }
  0x65   :  { %165 = vsyncpa [#allocation5], 1 }

</bundles_post_ra>
